<compile_context>
chip_gen: v7x
topology: tpu7x:2x2x1
jax: 0.10.0
libtpu: 0.0.40
codegen_flags: <defaults>
</compile_context>

<pallas_src>
import functools

import jax
import jax.numpy as jnp
from jax.experimental import pallas as pl
from jax.experimental.pallas import tpu as pltpu

LANE = 128


def _round_up(n, m):
    return ((n + m - 1) // m) * m


def _pad_last(a, target):
    pad = target - a.shape[-1]
    if pad <= 0:
        return a
    widths = [(0, 0)] * (a.ndim - 1) + [(0, pad)]
    return jnp.pad(a, widths)


def _largest_divisor_at_most(n, cap):
    cap = max(1, min(cap, n))
    for d in range(cap, 0, -1):
        if n % d == 0:
            return d
    return 1


def _tpu_budgets():
    """Return (vmem_limit_bytes, per_copy_budget_bytes, multi_core)."""
    vmem_cap = 64 << 20            # conservative default: v7x per-TC VMEM
    kind = ""
    try:
        info = pltpu.get_tpu_info()
        vmem_cap = int(getattr(info, "vmem_capacity_bytes", vmem_cap))
    except Exception:
        pass
    try:
        kind = (jax.devices()[0].device_kind or "").lower()
    except Exception:
        pass
    if vmem_cap >= (100 << 20):
        # v5e / v6e class: 128 MiB VMEM, one TensorCore per chip.
        return 96 << 20, 24 << 20, ("v7" in kind)
    # v7x class: 64 MiB VMEM per TensorCore, two TensorCores per chip.
    return 48 << 20, 10 << 20, True


# --------------------------------------------------------------------------
# Kernel: full fused layer chain for a block of `b_blk` beings.
# refs = (x_ref, w_first_ref, [w_mid_ref], [w_last_ref], b_ref, out_ref)
# --------------------------------------------------------------------------
def _widedeep_kernel(depth, hidden, b_blk, batch, x_shared, matmul_dtype,
                     has_mid, has_last, *refs):
    idx = 0
    x_ref = refs[idx]; idx += 1
    w_first_ref = refs[idx]; idx += 1
    w_mid_ref = None
    if has_mid:
        w_mid_ref = refs[idx]; idx += 1
    w_last_ref = None
    if has_last:
        w_last_ref = refs[idx]; idx += 1
    b_ref = refs[idx]; idx += 1
    out_ref = refs[idx]

    n_layers = depth + 1
    b_all = b_ref[...].astype(jnp.float32)          # (b_blk, n_layers, fo_max)

    x = x_ref[...].astype(jnp.float32)
    if x_shared:                                    # 1D-input path: shared x
        x = jnp.broadcast_to(x, (b_blk,) + x.shape[1:])
    h = x                                           # (b_blk, batch, din)

    def _mm(a, w):                                  # MXU matmul, f32 accumulate
        return jnp.einsum("bni,bio->bno",
                          a.astype(matmul_dtype), w.astype(matmul_dtype),
                          preferred_element_type=jnp.float32)

    # layer 0 (input -> hidden, or input -> output when depth == 0)
    f1 = w_first_ref.shape[-1]
    h = _mm(h, w_first_ref[...]) + b_all[:, 0:1, :f1]
    if n_layers == 1:
        h = jax.nn.sigmoid(h)                       # final_nl = nn.Sigmoid()
    else:
        h = jnp.maximum(h, 0.0)                     # non_linear = nn.ReLU()
        if has_mid:
            w_mid_all = w_mid_ref[...]              # (b_blk, depth-1, hid, hid)
            for j in range(depth - 1):
                h = _mm(h, w_mid_all[:, j]) + b_all[:, 1 + j:2 + j, :hidden]
                h = jnp.maximum(h, 0.0)
        dout_p = w_last_ref.shape[-1]
        h = _mm(h, w_last_ref[...]) + b_all[:, depth:depth + 1, :dout_p]
        h = jax.nn.sigmoid(h)                       # final_nl = nn.Sigmoid()

    out_ref[...] = h.astype(out_ref.dtype)


# --------------------------------------------------------------------------
# One-time parameter preparation (pad / cast / fuse).  Cache & reuse.
# --------------------------------------------------------------------------
def prepare_widedeep_params(weights, biases, *, matmul_dtype=jnp.bfloat16):
    beings = int(weights[0].shape[0])
    n_layers = len(weights)
    depth = n_layers - 1
    din = int(weights[0].shape[1])
    hidden = int(weights[0].shape[2]) if n_layers > 1 else 0
    dout = int(weights[-1].shape[2])
    dout_p = _round_up(dout, LANE)                  # lane-dense final store only

    if n_layers == 1:
        w_first = _pad_last(weights[0], dout_p).astype(matmul_dtype)
        f1 = dout_p
    else:
        w_first = weights[0].astype(matmul_dtype)
        f1 = hidden

    w_mid = None
    if depth >= 2:
        w_mid = jnp.stack([w.astype(matmul_dtype) for w in weights[1:depth]],
                          axis=1)                   # (beings, depth-1, hid, hid)

    w_last = None
    if n_layers > 1:
        w_last = _pad_last(weights[-1], dout_p).astype(matmul_dtype)

    fo_max = max(f1, hidden, dout_p)
    b_rows = [_pad_last(b.reshape(beings, -1), fo_max) for b in biases]
    b_fused = jnp.stack(b_rows, axis=1).astype(jnp.float32)

    dims = dict(beings=beings, n_layers=n_layers, depth=depth, din=din,
                hidden=hidden, dout=dout, dout_p=dout_p, f1=f1, fo_max=fo_max)
    return dict(w_first=w_first, w_mid=w_mid, w_last=w_last, b_fused=b_fused,
                matmul_dtype=matmul_dtype, dims=dims)


# --------------------------------------------------------------------------
# Forward pass.  x: (beings, batch, in) | (beings, in) | (in,)
# --------------------------------------------------------------------------
def widedeep_forward(x, params):
    d = params["dims"]
    beings, depth, n_layers = d["beings"], d["depth"], d["n_layers"]
    din, hidden, dout, dout_p = d["din"], d["hidden"], d["dout"], d["dout_p"]
    f1, fo_max = d["f1"], d["fo_max"]
    matmul_dtype = params["matmul_dtype"]
    w_first, w_mid = params["w_first"], params["w_mid"]
    w_last, b_fused = params["w_last"], params["b_fused"]

    # ---- input layout (same semantics as the PyTorch module) --------------
    squeeze_batch = False
    x_shared = False
    if x.ndim == 1:
        x3 = x[None, None, :]          # (1,1,din): broadcast in-kernel, not HBM
        x_shared = True
        squeeze_batch = True
    elif x.ndim == 2:
        x3 = x[:, None, :]
        squeeze_batch = True
    else:
        x3 = x
    batch = x3.shape[1]
    assert x3.shape[-1] == din, "input feature size mismatch"

    # ---- per-generation VMEM budget & blocking -----------------------------
    vmem_limit, copy_budget, multi_core = _tpu_budgets()
    w_bytes = 2 if matmul_dtype == jnp.bfloat16 else 4
    act_w = max(f1, hidden, dout_p)
    per_being = (
        4 * batch * din                                           # x block
        + w_bytes * din * f1                                      # first weight
        + (w_bytes * (depth - 1) * hidden * hidden if depth >= 2 else 0)
        + (w_bytes * hidden * dout_p if n_layers > 1 else 0)      # last weight
        + 4 * n_layers * fo_max                                   # fused bias
        + 4 * batch * dout_p                                      # output block
        + 2 * 4 * batch * act_w)                                  # live h / acc
    cap_blk = max(1, copy_budget // max(per_being, 1))
    if multi_core:
        # two TensorCores: aim for >= 4 grid steps (>= 2 per core) if possible
        target_steps = 4 if beings >= 4 else beings
        cap_blk = min(cap_blk, max(1, beings // max(target_steps, 1)))
    b_blk = _largest_divisor_at_most(beings, cap_blk)
    grid = beings // b_blk

    # ---- block specs: inner dims full-extent (no 128-padding of tiny dims) -
    def _spec3(shape):
        return pl.BlockSpec(shape, lambda g: (g, 0, 0))

    def _spec4(shape):
        return pl.BlockSpec(shape, lambda g: (g, 0, 0, 0))

    if x_shared:
        in_specs = [pl.BlockSpec((1, batch, din), lambda g: (0, 0, 0))]
    else:
        in_specs = [_spec3((b_blk, batch, din))]
    operands = [x3]

    in_specs.append(_spec3((b_blk, din, f1)))
    operands.append(w_first)
    if w_mid is not None:
        in_specs.append(_spec4((b_blk, depth - 1, hidden, hidden)))
        operands.append(w_mid)
    if w_last is not None:
        in_specs.append(_spec3((b_blk, hidden, dout_p)))
        operands.append(w_last)
    in_specs.append(_spec3((b_blk, n_layers, fo_max)))
    operands.append(b_fused)

    out_specs = _spec3((b_blk, batch, dout_p))

    # ---- cost estimate (lets XLA schedule around the custom call) ----------
    flops = 2 * beings * batch * (
        din * (hidden if n_layers > 1 else dout)
        + max(depth - 1, 0) * hidden * hidden
        + (hidden * dout if n_layers > 1 else 0))
    bytes_accessed = (
        int(x3.size) * x3.dtype.itemsize
        + sum(int(a.size) * a.dtype.itemsize
              for a in (w_first, w_mid, w_last, b_fused) if a is not None)
        + beings * batch * dout_p * 4)
    cost = pl.CostEstimate(flops=flops,
                           transcendentals=beings * batch * dout,
                           bytes_accessed=bytes_accessed)

    kernel = functools.partial(
        _widedeep_kernel, depth, hidden, b_blk, batch, x_shared, matmul_dtype,
        w_mid is not None, w_last is not None)

    out = pl.pallas_call(
        kernel,
        out_shape=jax.ShapeDtypeStruct((beings, batch, dout_p), x3.dtype),
        grid_spec=pltpu.PrefetchScalarGridSpec(
            num_scalar_prefetch=0,
            grid=(grid,),
            in_specs=in_specs,
            out_specs=out_specs),
        compiler_params=pltpu.CompilerParams(
            dimension_semantics=("parallel",),
            vmem_limit_bytes=vmem_limit),
        cost_estimate=cost,
    )(*operands)

    out = out[:, :, :dout]                 # drop padded lanes (they hold 0.5)
    if squeeze_batch:
        out = out[:, 0, :]
    return out


# --------------------------------------------------------------------------
# Deterministic init mirroring WideLinear (uniform +/- 1/sqrt(fan_in)).
# --------------------------------------------------------------------------
def init_widedeep_params(key, beings, input_size, hidden_size, depth, output_size):
    sizes = [input_size] + [hidden_size] * depth + [output_size]
    weights, biases = [], []
    for i in range(len(sizes) - 1):
        fi, fo = sizes[i], sizes[i + 1]
        key, kw, kb = jax.random.split(key, 3)
        bound = 1.0 / (fi ** 0.5)
        weights.append(jax.random.uniform(kw, (beings, fi, fo), jnp.float32,
                                          minval=-bound, maxval=bound))
        biases.append(jax.random.uniform(kb, (beings, 1, fo), jnp.float32,
                                         minval=-bound, maxval=bound))
    return weights, biases


def _reference(x3, weights, biases):
    h = x3
    n = len(weights)
    for i, (w, b) in enumerate(zip(weights, biases)):
        h = jnp.einsum("bni,bio->bno", h, w) + b
        h = jnp.maximum(h, 0.0) if i < n - 1 else jax.nn.sigmoid(h)
    return h


if __name__ == "__main__":
    beings, input_size, hidden_size, depth, output_size = 4, 8, 32, 2, 8
    batch = 8

    key = jax.random.PRNGKey(0)
    key, kx = jax.random.split(key)
    weights, biases = init_widedeep_params(
        key, beings, input_size, hidden_size, depth, output_size)
    x = jax.random.normal(kx, (beings, batch, input_size), jnp.float32)
    ref = _reference(x, weights, biases)

    # Default bf16-weight MXU path (f32 accumulate): per-layer activation cast
    # to bf16 loosens error vs "bf16 weights only" -- 5e-2 tolerance is ample.
    params_bf16 = prepare_widedeep_params(weights, biases)
    out = jax.block_until_ready(widedeep_forward(x, params_bf16))
    assert out.shape == (beings, batch, output_size)
    assert jnp.allclose(out, ref, atol=5e-2, rtol=5e-2), "bf16 mismatch vs reference"

    # f32 path (tight tolerance check of the kernel structure).
    params_f32 = prepare_widedeep_params(weights, biases, matmul_dtype=jnp.float32)
    out32 = jax.block_until_ready(widedeep_forward(x, params_f32))
    assert out32.shape == (beings, batch, output_size)
    assert jnp.allclose(out32, ref, atol=1e-4, rtol=1e-4), "f32 mismatch vs reference"

    # 2D input path (per-being single vector).
    x2 = x[:, 0, :]
    out2 = jax.block_until_ready(widedeep_forward(x2, params_f32))
    assert out2.shape == (beings, output_size)
    assert jnp.allclose(out2, ref[:, 0, :], atol=1e-4, rtol=1e-4), "2D path mismatch"

    # 1D input path (single vector shared by every being; broadcast in-kernel).
    x1 = x[0, 0, :]
    out1 = jax.block_until_ready(widedeep_forward(x1, params_f32))
    assert out1.shape == (beings, output_size)
    ref1 = _reference(jnp.broadcast_to(x1[None, None, :], (beings, 1, input_size)),
                      weights, biases)[:, 0, :]
    assert jnp.allclose(out1, ref1, atol=1e-4, rtol=1e-4), "1D path mismatch"

    print("KERNEL_OK")
</pallas_src>

<mosaic_0001>
module attributes {stable_mosaic.version = 11 : i64} {
  func.func @_widedeep_kernel(%arg0: i32, %arg1: memref<1x8x8xf32, #tpu.memory_space<vmem>>, %arg2: memref<1x8x32xbf16, #tpu.memory_space<vmem>>, %arg3: memref<1x1x32x32xbf16, #tpu.memory_space<vmem>>, %arg4: memref<1x32x128xbf16, #tpu.memory_space<vmem>>, %arg5: memref<1x3x128xf32, #tpu.memory_space<vmem>>, %arg6: memref<1x8x128xf32, #tpu.memory_space<vmem>>) attributes {dimension_semantics = [#tpu.dimension_semantics<parallel>], iteration_bounds = array<i64: 4>, scalar_prefetch = 0 : i64, scratch_operands = 0 : i64, tpu.core_type = #tpu.core_type<tc>, window_params = [{transform_indices = @transform_0, window_bounds = array<i64: 1, 8, 8>}, {transform_indices = @transform_1, window_bounds = array<i64: 1, 8, 32>}, {transform_indices = @transform_2, window_bounds = array<i64: 1, 1, 32, 32>}, {transform_indices = @transform_3, window_bounds = array<i64: 1, 32, 128>}, {transform_indices = @transform_4, window_bounds = array<i64: 1, 3, 128>}, {transform_indices = @transform_5, window_bounds = array<i64: 1, 8, 128>}]} {
    %c0 = arith.constant 0 : index
    %c0_0 = arith.constant 0 : index
    %c0_1 = arith.constant 0 : index
    %0 = vector.load %arg5[%c0, %c0_0, %c0_1] : memref<1x3x128xf32, #tpu.memory_space<vmem>>, vector<1x3x128xf32>
    %c0_2 = arith.constant 0 : index
    %c0_3 = arith.constant 0 : index
    %c0_4 = arith.constant 0 : index
    %1 = vector.load %arg1[%c0_2, %c0_3, %c0_4] : memref<1x8x8xf32, #tpu.memory_space<vmem>>, vector<1x8x8xf32>
    %c0_5 = arith.constant 0 : index
    %c0_6 = arith.constant 0 : index
    %c0_7 = arith.constant 0 : index
    %2 = vector.load %arg2[%c0_5, %c0_6, %c0_7] : memref<1x8x32xbf16, #tpu.memory_space<vmem>>, vector<1x8x32xbf16>
    %3 = arith.truncf %1 : vector<1x8x8xf32> to vector<1x8x8xbf16>
    "tpu.trace_start"() <{level = 10 : i32, message = "bni,bio->bno"}> : () -> ()
    %cst = arith.constant dense<0.000000e+00> : vector<1x8x32xf32>
    %4 = tpu.matmul %3, %2, %cst {dimension_numbers = #tpu.dot_dimension_numbers<[2], [1], [1], [2], [0, 0, 0, 1, 1, 2], [0], [0]>} : vector<1x8x8xbf16>, vector<1x8x32xbf16>, vector<1x8x32xf32> -> vector<1x8x32xf32>
    "tpu.trace_stop"() : () -> ()
    %5 = vector.extract_strided_slice %0 {offsets = [0, 0, 0], sizes = [1, 1, 32], strides = [1, 1, 1]} : vector<1x3x128xf32> to vector<1x1x32xf32>
    %6 = vector.broadcast %5 : vector<1x1x32xf32> to vector<1x8x32xf32>
    %7 = arith.addf %4, %6 : vector<1x8x32xf32>
    %cst_8 = arith.constant 0.000000e+00 : f32
    %8 = vector.broadcast %cst_8 : f32 to vector<1x8x32xf32>
    %9 = arith.maximumf %7, %8 : vector<1x8x32xf32>
    %c0_9 = arith.constant 0 : index
    %c0_10 = arith.constant 0 : index
    %c0_11 = arith.constant 0 : index
    %c0_12 = arith.constant 0 : index
    %10 = vector.load %arg3[%c0_9, %c0_10, %c0_11, %c0_12] : memref<1x1x32x32xbf16, #tpu.memory_space<vmem>>, vector<1x1x32x32xbf16>
    %11 = vector.shape_cast %10 : vector<1x1x32x32xbf16> to vector<1x32x32xbf16>
    %12 = arith.truncf %9 : vector<1x8x32xf32> to vector<1x8x32xbf16>
    "tpu.trace_start"() <{level = 10 : i32, message = "bni,bio->bno"}> : () -> ()
    %cst_13 = arith.constant dense<0.000000e+00> : vector<1x8x32xf32>
    %13 = tpu.matmul %12, %11, %cst_13 {dimension_numbers = #tpu.dot_dimension_numbers<[2], [1], [1], [2], [0, 0, 0, 1, 1, 2], [0], [0]>} : vector<1x8x32xbf16>, vector<1x32x32xbf16>, vector<1x8x32xf32> -> vector<1x8x32xf32>
    "tpu.trace_stop"() : () -> ()
    %14 = vector.extract_strided_slice %0 {offsets = [0, 1, 0], sizes = [1, 1, 32], strides = [1, 1, 1]} : vector<1x3x128xf32> to vector<1x1x32xf32>
    %15 = vector.broadcast %14 : vector<1x1x32xf32> to vector<1x8x32xf32>
    %16 = arith.addf %13, %15 : vector<1x8x32xf32>
    %cst_14 = arith.constant 0.000000e+00 : f32
    %17 = vector.broadcast %cst_14 : f32 to vector<1x8x32xf32>
    %18 = arith.maximumf %16, %17 : vector<1x8x32xf32>
    %c0_15 = arith.constant 0 : index
    %c0_16 = arith.constant 0 : index
    %c0_17 = arith.constant 0 : index
    %19 = vector.load %arg4[%c0_15, %c0_16, %c0_17] : memref<1x32x128xbf16, #tpu.memory_space<vmem>>, vector<1x32x128xbf16>
    %20 = arith.truncf %18 : vector<1x8x32xf32> to vector<1x8x32xbf16>
    "tpu.trace_start"() <{level = 10 : i32, message = "bni,bio->bno"}> : () -> ()
    %cst_18 = arith.constant dense<0.000000e+00> : vector<1x8x128xf32>
    %21 = tpu.matmul %20, %19, %cst_18 {dimension_numbers = #tpu.dot_dimension_numbers<[2], [1], [1], [2], [0, 0, 0, 1, 1, 2], [0], [0]>} : vector<1x8x32xbf16>, vector<1x32x128xbf16>, vector<1x8x128xf32> -> vector<1x8x128xf32>
    "tpu.trace_stop"() : () -> ()
    %22 = vector.extract_strided_slice %0 {offsets = [0, 2, 0], sizes = [1, 1, 128], strides = [1, 1, 1]} : vector<1x3x128xf32> to vector<1x1x128xf32>
    %23 = vector.broadcast %22 : vector<1x1x128xf32> to vector<1x8x128xf32>
    %24 = arith.addf %21, %23 : vector<1x8x128xf32>
    %25 = arith.negf %24 : vector<1x8x128xf32>
    %26 = math.exp %25 : vector<1x8x128xf32>
    %cst_19 = arith.constant 1.000000e+00 : f32
    %27 = vector.broadcast %cst_19 : f32 to vector<1x8x128xf32>
    %28 = arith.addf %27, %26 : vector<1x8x128xf32>
    %29 = arith.divf %27, %28 : vector<1x8x128xf32>
    %c0_20 = arith.constant 0 : index
    %c0_21 = arith.constant 0 : index
    %c0_22 = arith.constant 0 : index
    %30 = vector.load %arg6[%c0_20, %c0_21, %c0_22] : memref<1x8x128xf32, #tpu.memory_space<vmem>>, vector<1x8x128xf32>
    tpu.vector_store %arg6[%c0_20, %c0_21, %c0_22], %29 {strides = array<i32>} : memref<1x8x128xf32, #tpu.memory_space<vmem>>, vector<1x8x128xf32>,
    return
  }
  func.func @transform_0(%arg0: i32) -> (i32, i32, i32) {
    %c0_i32 = arith.constant 0 : i32
    %c0_i32_0 = arith.constant 0 : i32
    %c0_i32_1 = arith.constant 0 : i32
    return %arg0, %c0_i32, %c0_i32_0 : i32, i32, i32
  }
  func.func @transform_1(%arg0: i32) -> (i32, i32, i32) {
    %c0_i32 = arith.constant 0 : i32
    %c0_i32_0 = arith.constant 0 : i32
    %c0_i32_1 = arith.constant 0 : i32
    return %arg0, %c0_i32, %c0_i32_0 : i32, i32, i32
  }
  func.func @transform_2(%arg0: i32) -> (i32, i32, i32, i32) {
    %c0_i32 = arith.constant 0 : i32
    %c0_i32_0 = arith.constant 0 : i32
    %c0_i32_1 = arith.constant 0 : i32
    %c0_i32_2 = arith.constant 0 : i32
    return %arg0, %c0_i32, %c0_i32_0, %c0_i32_1 : i32, i32, i32, i32
  }
  func.func @transform_3(%arg0: i32) -> (i32, i32, i32) {
    %c0_i32 = arith.constant 0 : i32
    %c0_i32_0 = arith.constant 0 : i32
    %c0_i32_1 = arith.constant 0 : i32
    return %arg0, %c0_i32, %c0_i32_0 : i32, i32, i32
  }
  func.func @transform_4(%arg0: i32) -> (i32, i32, i32) {
    %c0_i32 = arith.constant 0 : i32
    %c0_i32_0 = arith.constant 0 : i32
    %c0_i32_1 = arith.constant 0 : i32
    return %arg0, %c0_i32, %c0_i32_0 : i32, i32, i32
  }
  func.func @transform_5(%arg0: i32) -> (i32, i32, i32) {
    %c0_i32 = arith.constant 0 : i32
    %c0_i32_0 = arith.constant 0 : i32
    %c0_i32_1 = arith.constant 0 : i32
    return %arg0, %c0_i32, %c0_i32_0 : i32, i32, i32
  }
}

</mosaic_0001>

<bundles_post_ra>
// kernel: tpu_custom_call.1
= control target key start
LH: loop header
LB: loop body
LE: loop exit
PB: predicated region body
PF: predicated region fallthrough
CT: control target
= control target key end

     0   :  { %s1280_s0 = inlined_call_operand.hbm [shape: f32[4,8,8], index: 0, kind: input, shape index: {}]   ;;  %s1281_s1 = inlined_call_operand.vmem [shape: bf16[4,8,32], index: 1, kind: input, shape index: {}]   ;;  %s1282_s2 = inlined_call_operand.hbm [shape: bf16[4,1,32,32], index: 2, kind: input, shape index: {}]   ;;  %s1283_s3 = inlined_call_operand.hbm [shape: bf16[4,32,128], index: 3, kind: input, shape index: {}]   ;;  %s1284_s4 = inlined_call_operand.vmem [shape: f32[4,3,128], index: 4, kind: input, shape index: {}]   ;;  %s1285_s5 = inlined_call_operand.hbm [shape: f32[4,8,128], index: 5, kind: output, shape index: {}]  }
   0x1   :  { %1295 = sst [smem:[#allocation15_spill]] %s1282_s2 }
   0x2   :  { %10 = vsyncpa [#allocation3], 0 }
   0x3   :  { %12 = vsyncpa [#allocation3 + $0x1], 0 }
   0x4   :  { %13 = vsyncpa [#allocation6], 0 }
   0x5   :  { %15 = vsyncpa [#allocation6 + $0x1], 0 }
   0x6   :  { %16 = vsyncpa [#allocation4], 0 }
   0x7   :  { %18 = vsyncpa [#allocation4 + $0x1], 0  ;;  %s1027_s18 = smov 0   ;;  %s1029_s19 = smov 0  }
   0x8   :  { %s1031_s20 = smov 0   ;;  %s1033_s21 = smov 0  }
   0x9 LB: > { %1296 = sst [smem:[#allocation12_spill]] %s983_s20  ;;  %s1048_s22 = sadd.s32 4294967295, %s987_s21   ;;  %s987_s21 = sphi %s1033_s21, %s1313_s21   ;;  %s983_s20 = sphi %s1031_s20, %s1315_s20   ;;  %s979_s19 = sphi %s1029_s19, %s1317_s19   ;;  %s975_s18 = sphi %s1027_s18, %s1316_s18  }
   0xa   : > { %s697_s23 = sadd.s32 4294967294, %s987_s21   ;;  %s1052_s24 = sadd.s32 1, %s987_s21  }
   0xb   : > { %1297 = sst [smem:[#allocation13_spill]] %s1052_s24  ;;  %s31_s25 = sadd.s32 1, %s983_s20 }
   0xc   : > { %s28_s26 = ssub.s32 %s987_s21, %s1052_s24  ;;  %p38_p0 = scmp.ne.s32.totalorder %s983_s20, %s979_s19 }
   0xd   : > { %p29_p1 = scmp.eq.s32.totalorder %s28_s26, 0  ;;  %p39_p2 = scmp.eq.s32.totalorder %s987_s21, 0 }
   0xe   : > { %p44_p3 = scmp.ne.s32.totalorder %s979_s19, %s975_s18  ;;  %p45_p4 = scmp.eq.s32.totalorder %s1048_s22, 0 }
   0xf   : > { %s1064_s27 = scalar_select %p29_p1, %s983_s20, %s31_s25  }
  0x10   : > { %p40_p5 = por %p39_p2, %p38_p0  ;;  %p1066_p6 = por %p45_p4, %p44_p3 }
  0x11   : > { %1298 = sst [smem:[#allocation14_spill]] %s1064_s27  ;;  %p172_p7 = scmp.eq.s32.totalorder %s1048_s22, 3 }
  0x12   : > { %s1299_s28 = scalar_select %p1066_p6, 1, 0 }
  0x13   : > { %p178_p8 = scmp.eq.s32.totalorder %s697_s23, 3  ;;  %p781_p9 = scmp.lt.s32.totalorder %s987_s21, 4 }
  0x14   : > { %p1072_p10 = por %p172_p7, %p38_p0  ;;  %s1081_s6 = sand.u32 1, %s983_s20  }
  0x15   : > { %p1076_p11 = por %p178_p8, %p44_p3  ;;  %p1083_p12 = pnand %p781_p9, %p40_p5 }
  0x16   : > { %s1300_s29 = scalar_select %p1072_p10, 1, 0 }
  0x17   : > { %s1301_s30 = scalar_select %p1076_p11, 1, 0 }
  0x18   : > { %s1302_s7 = scalar_select %p1083_p12, 1, 0 }
  0x19   : > { %s223_s8 = sand.u32 1, %s987_s21   ;;  %s702_s9 = sshll.u32 %s1081_s6, 4 }
  0x1a   : > { %s727_s10 = sshll.u32 %s987_s21, 8  ;;  %s1303_s2 = sld [smem:[#allocation15_spill]] }
  0x1b   : > { %s227_s14 = scalar_lea.vmem [#allocation5], %s702_s9  ;;  %s1101_s16 = scalar_lea.sflag [#allocation6], %s223_s8 }
  0x1c   : > { %s234_s15 = sshll.u32 %s227_s14, 4  ;;  %p1107_p0 = pneg %p1083_p12  ;;  %s1099_s15 = int_to_ptr.vmem [resolvable:$true] %s234_s15 }
  0x20   : > { %s1095_s13 = scalar_lea.hbm %s1303_s2, %s727_s10  ;;  %s832_s11 = scalar_lea.hbm %s1303_s2, 1024 }
  0x21   : > { %s827_s17 = scalar_lea.hbm %s1095_s13, 256  ;;  %p833_p3 = scmp.lt.u32.totalorder %s1095_s13, %s1303_s2 }
  0x22   : > { %p828_p13 = scmp.ne.s32.totalorder %s1095_s13, %s827_s17  ;;  %p834_p4 = scmp.lt.u32.totalorder %s832_s11, %s827_s17 }
  0x23   : > { %p836_p7 = scmp.lt.u32.totalorder %s827_s17, %s1095_s13 }
  0x24   : > { %p830_p1 = pnand %p1107_p0, %p828_p13  ;;  %p835_p5 = por %p834_p4, %p833_p3 }
  0x26   : > { %p831_p2 = pneg %p830_p1  ;;  %p837_p8 = por %p836_p7, %p835_p5 }
  0x28   : > { %p838_p9 = pnand %p837_p8, %p831_p2 }
  0x2a   : > { %841 = shalt.err (!%p838_p9)
}
  0x2b   : > { %s842_s8 = scalar_lea.vmem %s1099_s15, 256  ;;  %s989_s25 = smov [#allocation5]  }
  0x2c   : > { %p843_p13 = scmp.ne.s32.totalorder %s1099_s15, %s842_s8  ;;  %s847_s26 = sshll.u32 %s989_s25, 4  ;;  %s848_s26 = int_to_ptr.vmem [resolvable:$false] %s847_s26 }
  0x2d   : > { %s849_s12 = scalar_lea.vmem %s848_s26, 512  ;;  %p850_p10 = scmp.lt.s32.totalorder %s1099_s15, %s848_s26 }
  0x2e   : > { %p845_p1 = pnand %p843_p13, %p1107_p0  ;;  %p851_p6 = scmp.lt.s32.totalorder %s849_s12, %s842_s8 }
  0x30   : > { %p846_p11 = pneg %p845_p1  ;;  %p852_p3 = por %p851_p6, %p850_p10 }
  0x32   : > { %p853_p4 = pnand %p852_p3, %p846_p11 }
  0x34   : > { %856 = shalt.err (!%p853_p4)
}
  0x35   : > { %s1289_s17 = smov 64   ;;  %s1290_s11 = smov 4  }
  0x36   : > { %773 = dma.hbm_to_vmem [thread:$0]  (!%p1083_p12), %s1095_s13, 256, %s1099_s15, %s1101_s16, %s1289_s17, %s1289_s17, %s1290_s11  }
  0x37   : > { %s1139_s25 = scalar_lea.hbm %s1283_s3, %s727_s10  ;;  %s248_s26 = scalar_lea.vmem [#allocation7], %s702_s9 }
  0x38   : > { %s255_s12 = sshll.u32 %s248_s26, 4  ;;  %p708_p6 = scmp.ge.s32.totalorder %s987_s21, 1  ;;  %s1143_s12 = int_to_ptr.vmem [resolvable:$true] %s255_s12 }
  0x39   : > { %p270_p10 = scmp.lt.s32.totalorder %s987_s21, 5  ;;  %s700_s2 = sshll.u32 %s1081_s6, 3 }
  0x3a   : > { %s701_s27 = sshll.u32 %s987_s21, 7  ;;  %s202_s9 = scalar_lea.vmem [#allocation2], %s700_s2 }
  0x3b   : > { %p1149_p11 = pnand %p708_p6, %p270_p10  ;;  %s1156_s14 = scalar_lea.hbm %s1280_s0, %s701_s27 }
  0x3c   : > { %s209_s10 = sshll.u32 %s202_s9, 4  ;;  %s199_s8 = scalar_lea.sflag [#allocation3], %s1081_s6  ;;  %s210_s10 = int_to_ptr.vmem [resolvable:$true] %s209_s10 }
  0x3d   : > { %s1305_s20 = scalar_select %p1149_p11, 1, 0 }
  0x3e   : > { %s857_s26 = scalar_lea.hbm %s1156_s14, 128  ;;  %s862_s24 = scalar_lea.hbm %s1280_s0, 512 }
  0x3f   : > { %p858_p2 = scmp.ne.s32.totalorder %s1156_s14, %s857_s26  ;;  %p863_p8 = scmp.lt.u32.totalorder %s1156_s14, %s1280_s0 }
  0x40   : > { %p864_p9 = scmp.lt.u32.totalorder %s862_s24, %s857_s26  ;;  %p866_p1 = scmp.lt.u32.totalorder %s857_s26, %s1156_s14 }
  0x41   : > { %p860_p5 = pnand %p858_p2, %p1107_p0 }
  0x42   : > { %p865_p13 = por %p864_p9, %p863_p8 }
  0x43   : > { %p861_p7 = pneg %p860_p5 }
  0x44   : > { %p867_p3 = por %p866_p1, %p865_p13 }
  0x46   : > { %p868_p4 = pnand %p867_p3, %p861_p7 }
  0x48   : > { %871 = shalt.err (!%p868_p4)
}
  0x49   : > { %s872_s2 = scalar_lea.vmem %s210_s10, 128  ;;  %s992_s6 = smov [#allocation2]  }
  0x4a   : > { %p873_p6 = scmp.ne.s32.totalorder %s210_s10, %s872_s2  ;;  %s877_s15 = sshll.u32 %s992_s6, 4  ;;  %s878_s15 = int_to_ptr.vmem [resolvable:$false] %s877_s15 }
  0x4b   : > { %s879_s17 = scalar_lea.vmem %s878_s15, 256  ;;  %p880_p5 = scmp.lt.s32.totalorder %s210_s10, %s878_s15 }
  0x4c   : > { %p875_p10 = pnand %p873_p6, %p1107_p0  ;;  %p881_p11 = scmp.lt.s32.totalorder %s879_s17, %s872_s2 }
  0x4e   : > { %p876_p2 = pneg %p875_p10  ;;  %p882_p12 = por %p881_p11, %p880_p5 }
  0x50   : > { %p883_p8 = pnand %p882_p12, %p876_p2 }
  0x52   : > { %886 = shalt.err (!%p883_p8)
}
  0x53   : > { %p1306_p9 = scmp.ne.s32.totalorder %s1302_s7, 0  ;;  %s887_s24 = scalar_lea.hbm %s1139_s25, 256 }
  0x54   : > { %p888_p7 = scmp.ne.s32.totalorder %s1139_s25, %s887_s24  ;;  %s892_s26 = scalar_lea.hbm %s1283_s3, 1024 }
  0x55   : > { %770 = dma.hbm_to_vmem [thread:$0]  (!%p1306_p9), %s1156_s14, 128, %s210_s10, %s199_s8  }
  0x56   : > { %p890_p13 = pnand %p888_p7, %p1107_p0  ;;  %p893_p12 = scmp.lt.u32.totalorder %s1139_s25, %s1283_s3 }
  0x57   : > { %p894_p11 = scmp.lt.u32.totalorder %s892_s26, %s887_s24  ;;  %p896_p4 = scmp.lt.u32.totalorder %s887_s24, %s1139_s25 }
  0x58   : > { %p891_p1 = pneg %p890_p13 }
  0x59   : > { %p895_p3 = por %p894_p11, %p893_p12 }
  0x5b   : > { %p897_p6 = por %p896_p4, %p895_p3 }
  0x5d   : > { %p898_p10 = pnand %p897_p6, %p891_p1 }
  0x5f   : > { %901 = shalt.err (!%p898_p10)
}
  0x60   : > { %s902_s14 = scalar_lea.vmem %s1143_s12, 256  ;;  %s993_s10 = smov [#allocation7]  }
  0x61   : > { %p903_p2 = scmp.ne.s32.totalorder %s1143_s12, %s902_s14  ;;  %s907_s8 = sshll.u32 %s993_s10, 4  ;;  %s908_s8 = int_to_ptr.vmem [resolvable:$false] %s907_s8 }
  0x62   : > { %s909_s2 = scalar_lea.vmem %s908_s8, 512  ;;  %p910_p7 = scmp.lt.s32.totalorder %s1143_s12, %s908_s8 }
  0x63   : > { %p905_p5 = pnand %p903_p2, %p1107_p0  ;;  %p911_p13 = scmp.lt.s32.totalorder %s909_s2, %s902_s14 }
  0x65   : > { %p906_p8 = pneg %p905_p5  ;;  %p912_p12 = por %p911_p13, %p910_p7 }
  0x67   : > { %p913_p11 = pnand %p912_p12, %p906_p8 }
  0x69   : > { %916 = shalt.err (!%p913_p11)
}
  0x6a   : > { %s1307_s6 = smov 4   ;;  %s1308_s15 = smov 64  }
  0x6b   : > { %776 = dma.hbm_to_vmem [thread:$0]  (!%p1306_p9), %s1139_s25, 256, %s1143_s12, %s1101_s16, %s1308_s15, %s1308_s15, %s1307_s6  }
  0x6c   : > { %p1309_p0 = scmp.ne.s32.totalorder %s1305_s20, 0 }
  0x6d   : > { %s1204_s23 = sand.u32 (!%p1309_p0), 1, %s979_s19   ;;  %p1310_p1 = scmp.ne.s32.totalorder (!%p1309_p0), %s1299_s28, 0 }
  0x6e   : > { %274 = sbr.rel (%p1309_p0) target bundleno = 822 (0x336), region = 40  ;;  %s709_s17 = sshll.u32 (!%p1309_p0), %s1204_s23, 3 }
  0x6f   : > { %s277_s24 = scalar_lea.sflag (!%p1309_p0), [#allocation3], %s1204_s23  ;;  %s280_s7 = scalar_lea.vmem (!%p1309_p0), [#allocation2], %s709_s17 }
  0x75   : > { %962 = dma.done.wait (%p1310_p1), %s277_s24, 128  }
  0x76   : > { %964 = vsyncadd (%p1310_p1), %s277_s24, 4294967168  ;;  %s285_s20 = sand.u32 1, %s1048_s22   ;;  %s710_s16 = sshll.u32 %s1204_s23, 4 }
  0x77   : > { %s286_s25 = scalar_lea.sflag [#allocation6], %s285_s20  ;;  %s289_s12 = scalar_lea.vmem [#allocation5], %s710_s16 }
  0x78   : > { %966 = dma.done.wait (%p1310_p1), %s286_s25, 512  }
  0x79   : > { %968 = vsyncadd (%p1310_p1), %s286_s25, 4294966784  ;;  %p343_p9 = scmp.lt.s32.totalorder %s1048_s22, 3  ;;  %v994_v0 = vmov 0.0   ;;  %vm995_vm0 = vmmov 0   ;;  %vm364_vm1 = vcmask 1043456   ;;  %v353_v2 = vld [vmem:[%s280_s7] sm:$0xff]  ;;  %v356_v8 = vlaneseq }
  0x7a   : > { %737 = vmatprep.subr.bf16.mxu0 %v994_v0  ;;  %739 = vmatprep.mubr.msk.bf16.mxu0 %vm995_vm0, %v994_v0  ;;  %v355_v4 = vpack.c.bf16 %v353_v2, %v353_v2  ;;  %vm360_vm2 = vcmask 64512   ;;  %v819_v5 = vld [vmem:[%s289_s12] sm:$0xff]   ;;  %v820_v6 = vld [vmem:[%s289_s12 + $0x8] sm:$0xff]   ;;  %s298_s28 = scalar_lea.vmem [#allocation7], %s710_s16  ;;  %vm430_vm3 = vcmask 261120   ;;  %s724_s2 = sshll.u32 %s1048_s22, 7 }
  0x7b   : > { %s344_s11 = scalar_select %p343_p9, %s1048_s22, 3  ;;  %743 = vmatprep.subr.bf16.mxu1 %v994_v0  ;;  %747 = vmatprep.mubr.msk.bf16.mxu1 %vm995_vm0, %v994_v0  ;;  %v821_v7 = vld [vmem:[%s298_s28] sm:$0xff]   ;;  %v357_v9 = vshrl.u32 %v356_v8, 7  ;;  %v822_v20 = vld [vmem:[%s298_s28 + $0x8] sm:$0xff]  }
  0x7c   : > { %744 = vmatpush3.bf16.msra.mxu1 %v819_v5  ;;  %s342_s6 = scalar_lea.vmem [#allocation8], %s709_s17  ;;  %s1237_s20 = scalar_lea.hbm %s1285_s5, %s724_s2 }
  0x7d   : > { %s713_s9 = sshll.u32 %s344_s11, 2  ;;  %745 = vmatprep.subr.bf16.mxu1 %v994_v0  ;;  %v358_v10 = vsub.s32 0, %v357_v9  ;;  %v416_v21 = vsub.s32 1, %v357_v9  ;;  %v482_v30 = vsub.s32 2, %v357_v9  ;;  %s560_s15 = sshll.u32 %s342_s6, 4  ;;  %s1239_s15 = int_to_ptr.vmem [resolvable:$true] %s560_s15 }
  0x7e   : > { %s346_s27 = scalar_lea.vmem %s1281_s1, %s713_s9  ;;  %s350_s8 = scalar_lea.vmem %s1284_s4, %s713_s9 }
  0x7f   : > { %v354_v1 = vld [vmem:[%s346_s27] sm:$0xf]  ;;  %s547_s16 = scalar_lea.sflag [#allocation4], %s1204_s23  ;;  %s917_s25 = scalar_lea.vmem %s1239_s15, 128 }
  0x80   : > { %v366_v3 = vsel %vm364_vm1, %v354_v1, 0  ;;  %746 = vmatpush3.bf16.msra.mxu1 %v820_v6  ;;  %v352_v11 = vld [vmem:[%s350_s8] sm:$0x7]  ;;  %p918_p3 = scmp.ne.s32.totalorder %s1239_s15, %s917_s25  ;;  %p1311_p4 = scmp.ne.s32.totalorder %s1300_s29, 0 }
  0x81   : > { %738 = vmatpush3.bf16.msra.mxu0 %v366_v3  ;;  %v359_v12 = vrot.slane %v352_v11, %v358_v10  ;;  %v417_v22 = vrot.slane %v352_v11, %v416_v21  ;;  %v483_v31 = vrot.slane %v352_v11, %v482_v30  ;;  %s996_s22 = smov [#allocation8]  }
  0x82   : > { %751 = vmatprep.subr.bf16.mxu0 %v994_v0  ;;  %p919_p6 = pnand %p918_p3, %p1311_p4  ;;  %s921_s17 = sshll.u32 %s996_s22, 4  ;;  %s922_s17 = int_to_ptr.vmem [resolvable:$false] %s921_s17 }
  0x83   : > { %s923_s12 = scalar_lea.vmem %s922_s17, 256  ;;  %p924_p2 = scmp.lt.s32.totalorder %s1239_s15, %s922_s17 }
  0x84   : > { %740 = vmatmul.mubr.msk.bf16.vlgmr.msra.gmra.mrb[0].mxu0 %vm360_vm2, %v355_v4  ;;  %p920_p10 = pneg %p919_p6  ;;  %p925_p5 = scmp.lt.s32.totalorder %s923_s12, %s917_s25 }
  0x85   : > { %755 = vmatprep.mubr.msk.bf16.mxu0 %vm995_vm0, %v994_v0  ;;  %752 = vmatpush3.bf16.msra.mxu0 %v821_v7 }
  0x86   : > { %753 = vmatprep.subr.bf16.mxu0 %v994_v0  ;;  %p926_p8 = por %p925_p5, %p924_p2 }
  0x88   : > { %p927_p7 = pnand %p926_p8, %p920_p10 }
  0x89   : > { %754 = vmatpush3.bf16.msra.mxu0 %v822_v20 }
 0x157   : > { %v402_v13 = vpop.f32.mrb[0].mxu0 }
 0x158   : > { %v403_v14 = vadd.f32 %v402_v13, %v359_v12  ;;  %v741_v15 = vpop.f32.mrb[1].mxu0 }
 0x159   : > { %v405_v16 = vpop.f32.mrb[2].mxu0 }
 0x15a   : > { %v408_v17 = vmax.f32 %v403_v14, 0.0  ;;  %v742_v18 = vpop.f32.mrb[3].mxu0 }
 0x15c   : > { %v413_v19 = vpack.c.bf16 %v408_v17, %v408_v17 }
 0x15e   : > { %748 = vmatmul.mubr.msk.bf16.vlgmr.msra.gmra.mrb[0].mxu1 %vm430_vm3, %v413_v19 }
 0x231   : > { %v468_v23 = vpop.f32.mrb[0].mxu1 }
 0x232   : > { %v469_v24 = vadd.f32 %v468_v23, %v417_v22  ;;  %v749_v25 = vpop.f32.mrb[1].mxu1 }
 0x233   : > { %v471_v26 = vpop.f32.mrb[2].mxu1 }
 0x234   : > { %v474_v27 = vmax.f32 %v469_v24, 0.0  ;;  %v750_v28 = vpop.f32.mrb[3].mxu1 }
 0x236   : > { %v479_v29 = vpack.c.bf16 %v474_v27, %v474_v27 }
 0x238   : > { %756 = vmatmul.mubr.msk.bf16.vlgmr.msra.gmra.mrb[4].mxu0 %vm430_vm3, %v479_v29 }
 0x30b   : > { %v533_v32 = vpop.f32.mrb[4].mxu0 }
 0x30c   : > { %v534_v33 = vadd.f32 %v533_v32, %v483_v31  ;;  %v757_v34 = vpop.f32.mrb[5].mxu0 }
 0x30d   : > { %v536_v35 = vpop.f32.mrb[6].mxu0 }
 0x30e   : > { %v722_v36 = vmul.f32 -1.442695, %v534_v33  ;;  %v758_v37 = vpop.f32.mrb[7].mxu0 }
 0x310   : > { %823 = vpow2.f32 %v722_v36 }
 0x31a   : > { %v824_v38 = vpop.eup %823 }
 0x31b   : > { %v542_v39 = vadd.f32 1.0, %v824_v38 }
 0x31d   : > { %825 = vrcp.f32 %v542_v39 }
 0x327   : > { %v826_v40 = vpop.eup %825 }
 0x328   : > { %545 = vst [vmem:[%s342_s6] sm:$0xff] %v826_v40 }
 0x329   : > { %930 = shalt.err (!%p927_p7)
}
 0x32a   : > { %s931_s23 = scalar_lea.hbm %s1237_s20, 128  ;;  %s935_s26 = scalar_lea.hbm %s1285_s5, 512 }
 0x32b   : > { %p932_p13 = scmp.ne.s32.totalorder %s1237_s20, %s931_s23  ;;  %p936_p0 = scmp.lt.u32.totalorder %s1237_s20, %s1285_s5 }
 0x32c   : > { %p937_p1 = scmp.lt.u32.totalorder %s935_s26, %s931_s23  ;;  %p939_p3 = scmp.lt.u32.totalorder %s931_s23, %s1237_s20 }
 0x32d   : > { %p933_p12 = pnand %p932_p13, %p1311_p4 }
 0x32e   : > { %p938_p9 = por %p937_p1, %p936_p0 }
 0x32f   : > { %p934_p11 = pneg %p933_p12 }
 0x330   : > { %p940_p6 = por %p939_p3, %p938_p9 }
 0x332   : > { %p941_p10 = pnand %p940_p6, %p934_p11 }
 0x334   : > { %944 = shalt.err (!%p941_p10)
}
 0x335   : > { %765 = dma.vmem_to_hbm [thread:$0]  (%p1311_p4), %s1239_s15, 128, %s1237_s20, %s547_s16  }
 0x336 PF: > { %p782_p2 = scmp.ge.s32.totalorder %s987_s21, 2  ;;  %s572_s28 = sand.u32 1, %s975_s18  }
 0x337   : > { %p1312_p5 = scmp.ne.s32.totalorder %s1301_s30, 0  ;;  %s573_s14 = scalar_lea.sflag [#allocation4], %s572_s28 }
 0x339   : > { %p778_p8 = pnand %p782_p2, %p1312_p5 }
 0x33b   : > { %970 = dma.done.wait (!%p778_p8), %s573_s14, 128  }
 0x33c   : > { %972 = vsyncadd (!%p778_p8), %s573_s14, 4294967168  ;;  %s1313_s21 = sld [smem:[#allocation13_spill]]  ;;  %s1314_s10 = sld [smem:[#allocation12_spill]] }
 0x33d   : > { %s1315_s20 = sld [smem:[#allocation14_spill]]  ;;  %s1316_s18 = smov %s979_s19 }
 0x342   : > { %p21_p7 = scmp.ge.s32.totalorder %s1313_s21, 6   ;;  %s1317_s19 = smov %s1314_s10 }
 0x344   :  { %23 = sbr.rel (!%p21_p7) target bundleno = 9 (0x9), region = 115 }
 0x34b   :  { %578 = vsyncpa [#allocation3], 1 }
 0x34c   :  { %580 = vsyncpa [#allocation3 + $0x1], 1 }
 0x34d   :  { %581 = vsyncpa [#allocation6], 1 }
 0x34e   :  { %583 = vsyncpa [#allocation6 + $0x1], 1 }
 0x34f   :  { %584 = vsyncpa [#allocation4], 1 }
 0x350   :  { %586 = vsyncpa [#allocation4 + $0x1], 1 }

</bundles_post_ra>
